<compile_context>
chip_gen: v5e
topology: v5e:2x2
jax: 0.10.0
libtpu: 0.0.40
codegen_flags: <defaults>
</compile_context>

<pallas_src>
import jax
import jax.numpy as jnp
from jax import lax
from jax.experimental import pallas as pl
from jax.experimental.pallas import tpu as pltpu


def _maxpool3x3_kernel(x_ref, selr_ref, selc_ref, o_ref):
    # x_ref:    (TB, H, W)    input planes
    # selr_ref: (Ho, Lh)      one-hot row selector,    selr[ho, 3*ho] = 1
    # selc_ref: (Lw, Wo)      one-hot column selector, selc[3*wo, wo] = 1
    # o_ref:    (TB, Ho, Wo)  pooled output planes
    tb, H, W = x_ref.shape
    Ho, Lh = selr_ref.shape
    Lw, Wo = selc_ref.shape

    x = x_ref[...]

    # 3-tap sliding max along H (sublane dim) via static slices.
    sh = jnp.maximum(jnp.maximum(x[:, 0:Lh, :], x[:, 1:Lh + 1, :]), x[:, 2:Lh + 2, :])
    # 3-tap sliding max along W (lane dim) via static slices.
    s = jnp.maximum(jnp.maximum(sh[:, :, 0:Lw], sh[:, :, 1:Lw + 1]), sh[:, :, 2:Lw + 2])
    # s[b, i, j] = max over the 3x3 window whose top-left corner is (i, j).

    # Stride-3 row subsample: exact one-hot selection matmul on the MXU.
    selr = jnp.broadcast_to(selr_ref[...][None, :, :], (tb, Ho, Lh))
    t = jnp.einsum("boh,bhw->bow", selr, s,
                   preferred_element_type=jnp.float32).astype(s.dtype)
    # t[b, ho, j] = s[b, 3*ho, j]   (exact: single 1.0 product, f32 accumulate)

    # Stride-3 column subsample: second one-hot selection matmul.
    selc = jnp.broadcast_to(selc_ref[...][None, :, :], (tb, Lw, Wo))
    out = jnp.einsum("bow,bwc->boc", t, selc, preferred_element_type=jnp.float32)
    # out[b, ho, wo] = s[b, 3*ho, 3*wo] = max over the 3x3 window.

    o_ref[...] = out.astype(o_ref.dtype)


def _ceil_to(a, b):
    return (a + b - 1) // b * b


def _tile_sublane(dtype):
    return {4: 8, 2: 16, 1: 32}.get(jnp.dtype(dtype).itemsize, 8)


def _tpu_vmem_and_cores():
    """Best-effort query of per-core VMEM capacity and TensorCore count."""
    vmem_bytes = 64 * 1024 * 1024   # conservative fallback (v7x-sized)
    num_cores = 2
    try:
        info = pltpu.get_tpu_info()
        vmem_bytes = int(getattr(info, "vmem_capacity_bytes", vmem_bytes))
        for attr in ("num_cores", "cores_per_chip", "core_count", "num_tensor_cores"):
            v = getattr(info, attr, None)
            if v:
                num_cores = int(v)
                break
    except Exception:
        pass
    return vmem_bytes, num_cores


def maxpool2d_3x3(x, *, planes_per_step=None):
    """MaxPool2d(kernel_size=3, stride=3), NCHW -> NCHW."""
    N, C, H, W = x.shape
    if H < 3 or W < 3:
        raise ValueError("spatial dims must be >= 3 for a 3x3 pool")
    Ho = (H - 3) // 3 + 1
    Wo = (W - 3) // 3 + 1
    Lh, Lw = H - 2, W - 2
    NC = N * C

    orig_dtype = x.dtype
    if jnp.issubdtype(orig_dtype, jnp.floating):
        compute_dtype = orig_dtype
    else:
        # TODO(synk): integer maxpool is exact here only for |x| < 2^24 (f32 MXU path).
        compute_dtype = jnp.float32
    itemsize = jnp.dtype(compute_dtype).itemsize
    sub = _tile_sublane(compute_dtype)

    vmem_cap, num_cores = _tpu_vmem_and_cores()
    # 96 MiB on 128 MiB parts (v5e/v6e), 48 MiB on 64 MiB/TC (v7x).
    vmem_limit = min(96 * 1024 * 1024, (vmem_cap * 3) // 4)

    def _pad2(r, c, isz, s):
        return _ceil_to(r, s) * _ceil_to(c, 128) * isz

    # Per-plane VMEM footprint: double-buffered in/out blocks + in-body temps.
    in_plane = _pad2(H, W, itemsize, sub)
    out_plane = _pad2(Ho, Wo, itemsize, sub)
    tmp_plane = (_pad2(Lh, W, itemsize, sub)        # sh
                 + _pad2(Lh, Lw, itemsize, sub)     # s
                 + _pad2(Ho, Lh, itemsize, sub)     # broadcast row selector
                 + _pad2(Ho, Lw, 4, 8)              # t (f32 accumulator)
                 + _pad2(Ho, Lw, itemsize, sub)     # t cast back
                 + _pad2(Lw, Wo, itemsize, sub)     # broadcast col selector
                 + _pad2(Ho, Wo, 4, 8))             # f32 output before cast
    per_plane = 2 * (in_plane + out_plane) + tmp_plane

    if planes_per_step is None:
        budget = int(vmem_limit * 0.55)
        planes_per_step = max(1, budget // per_plane)

    TB = int(max(1, min(planes_per_step, NC, 1024)))
    if num_cores > 1:
        # Keep >= ~4 grid steps per TensorCore so both cores stay pipelined.
        TB = int(max(1, min(TB, pl.cdiv(NC, 4 * num_cores))))

    # One-hot selection matrices (built once, VMEM-resident via constant index_map).
    selr = (jnp.arange(Lh)[None, :] == 3 * jnp.arange(Ho)[:, None]).astype(compute_dtype)
    selc = (jnp.arange(Lw)[:, None] == 3 * jnp.arange(Wo)[None, :]).astype(compute_dtype)

    xf = x.reshape(NC, H, W).astype(compute_dtype)

    out = pl.pallas_call(
        _maxpool3x3_kernel,
        out_shape=jax.ShapeDtypeStruct((NC, Ho, Wo), compute_dtype),
        grid_spec=pltpu.PrefetchScalarGridSpec(
            num_scalar_prefetch=0,
            grid=(pl.cdiv(NC, TB),),           # ragged last block masked by Pallas
            in_specs=[
                pl.BlockSpec((TB, H, W), lambda i: (i, 0, 0)),
                pl.BlockSpec((Ho, Lh), lambda i: (0, 0)),
                pl.BlockSpec((Lw, Wo), lambda i: (0, 0)),
            ],
            out_specs=pl.BlockSpec((TB, Ho, Wo), lambda i: (i, 0, 0)),
        ),
        compiler_params=pltpu.CompilerParams(
            dimension_semantics=("parallel",),
            vmem_limit_bytes=int(vmem_limit),
        ),
        cost_estimate=pl.CostEstimate(
            flops=int(2 * NC * Ho * Lw * (Lh + Wo)),
            transcendentals=0,
            bytes_accessed=int(NC * (H * W + Ho * Wo) * itemsize),
        ),
    )(xf, selr, selc)

    return out.reshape(N, C, Ho, Wo).astype(orig_dtype)


if __name__ == "__main__":
    key = jax.random.PRNGKey(0)
    x = jax.random.normal(key, (2, 4, 16, 16), dtype=jnp.float32)

    y = jax.block_until_ready(maxpool2d_3x3(x))

    # Pure-JAX reference: 3x3 window max, stride 3, VALID (matches nn.MaxPool2d(3, 3)).
    ref = lax.reduce_window(
        x, -jnp.inf, lax.max,
        window_dimensions=(1, 1, 3, 3),
        window_strides=(1, 1, 3, 3),
        padding="VALID",
    )

    assert y.shape == (2, 4, 5, 5), y.shape
    assert jnp.array_equal(y, ref), "mismatch vs reduce_window reference"

    print("KERNEL_OK")
</pallas_src>

<mosaic_0001>
module attributes {stable_mosaic.version = 11 : i64} {
  func.func @_maxpool3x3_kernel(%arg0: i32, %arg1: memref<1x16x16xf32, #tpu.memory_space<vmem>>, %arg2: memref<5x14xf32, #tpu.memory_space<vmem>>, %arg3: memref<14x5xf32, #tpu.memory_space<vmem>>, %arg4: memref<1x5x5xf32, #tpu.memory_space<vmem>>) attributes {dimension_semantics = [#tpu.dimension_semantics<parallel>], iteration_bounds = array<i64: 8>, scalar_prefetch = 0 : i64, scratch_operands = 0 : i64, tpu.core_type = #tpu.core_type<tc>, window_params = [{transform_indices = @transform_0, window_bounds = array<i64: 1, 16, 16>}, {pipeline_mode = #tpu.pipeline_mode<synchronous>, transform_indices = @transform_1, window_bounds = array<i64: 5, 14>}, {pipeline_mode = #tpu.pipeline_mode<synchronous>, transform_indices = @transform_2, window_bounds = array<i64: 14, 5>}, {transform_indices = @transform_3, window_bounds = array<i64: 1, 5, 5>}]} {
    %c0 = arith.constant 0 : index
    %c0_0 = arith.constant 0 : index
    %c0_1 = arith.constant 0 : index
    %0 = vector.load %arg1[%c0, %c0_0, %c0_1] : memref<1x16x16xf32, #tpu.memory_space<vmem>>, vector<1x16x16xf32>
    %1 = vector.extract_strided_slice %0 {offsets = [0, 0, 0], sizes = [1, 14, 16], strides = [1, 1, 1]} : vector<1x16x16xf32> to vector<1x14x16xf32>
    %2 = vector.extract_strided_slice %0 {offsets = [0, 1, 0], sizes = [1, 14, 16], strides = [1, 1, 1]} : vector<1x16x16xf32> to vector<1x14x16xf32>
    %3 = arith.maximumf %1, %2 : vector<1x14x16xf32>
    %4 = vector.extract_strided_slice %0 {offsets = [0, 2, 0], sizes = [1, 14, 16], strides = [1, 1, 1]} : vector<1x16x16xf32> to vector<1x14x16xf32>
    %5 = arith.maximumf %3, %4 : vector<1x14x16xf32>
    %6 = vector.extract_strided_slice %5 {offsets = [0, 0, 0], sizes = [1, 14, 14], strides = [1, 1, 1]} : vector<1x14x16xf32> to vector<1x14x14xf32>
    %7 = vector.extract_strided_slice %5 {offsets = [0, 0, 1], sizes = [1, 14, 14], strides = [1, 1, 1]} : vector<1x14x16xf32> to vector<1x14x14xf32>
    %8 = arith.maximumf %6, %7 : vector<1x14x14xf32>
    %9 = vector.extract_strided_slice %5 {offsets = [0, 0, 2], sizes = [1, 14, 14], strides = [1, 1, 1]} : vector<1x14x16xf32> to vector<1x14x14xf32>
    %10 = arith.maximumf %8, %9 : vector<1x14x14xf32>
    %c0_2 = arith.constant 0 : index
    %c0_3 = arith.constant 0 : index
    %11 = vector.load %arg2[%c0_2, %c0_3] : memref<5x14xf32, #tpu.memory_space<vmem>>, vector<5x14xf32>
    %12 = vector.shape_cast %11 : vector<5x14xf32> to vector<1x5x14xf32>
    "tpu.trace_start"() <{level = 10 : i32, message = "boh,bhw->bow"}> : () -> ()
    %cst = arith.constant dense<0.000000e+00> : vector<1x5x14xf32>
    %13 = tpu.matmul %12, %10, %cst {dimension_numbers = #tpu.dot_dimension_numbers<[2], [1], [1], [2], [0, 0, 0, 1, 1, 2], [0], [0]>} : vector<1x5x14xf32>, vector<1x14x14xf32>, vector<1x5x14xf32> -> vector<1x5x14xf32>
    "tpu.trace_stop"() : () -> ()
    %c0_4 = arith.constant 0 : index
    %c0_5 = arith.constant 0 : index
    %14 = vector.load %arg3[%c0_4, %c0_5] : memref<14x5xf32, #tpu.memory_space<vmem>>, vector<14x5xf32>
    %15 = vector.shape_cast %14 : vector<14x5xf32> to vector<1x14x5xf32>
    "tpu.trace_start"() <{level = 10 : i32, message = "bow,bwc->boc"}> : () -> ()
    %cst_6 = arith.constant dense<0.000000e+00> : vector<1x5x5xf32>
    %16 = tpu.matmul %13, %15, %cst_6 {dimension_numbers = #tpu.dot_dimension_numbers<[2], [1], [1], [2], [0, 0, 0, 1, 1, 2], [0], [0]>} : vector<1x5x14xf32>, vector<1x14x5xf32>, vector<1x5x5xf32> -> vector<1x5x5xf32>
    "tpu.trace_stop"() : () -> ()
    %c0_7 = arith.constant 0 : index
    %c0_8 = arith.constant 0 : index
    %c0_9 = arith.constant 0 : index
    %17 = vector.load %arg4[%c0_7, %c0_8, %c0_9] : memref<1x5x5xf32, #tpu.memory_space<vmem>>, vector<1x5x5xf32>
    tpu.vector_store %arg4[%c0_7, %c0_8, %c0_9], %16 {strides = array<i32>} : memref<1x5x5xf32, #tpu.memory_space<vmem>>, vector<1x5x5xf32>,
    return
  }
  func.func @transform_0(%arg0: i32) -> (i32, i32, i32) {
    %c0_i32 = arith.constant 0 : i32
    %c0_i32_0 = arith.constant 0 : i32
    %c0_i32_1 = arith.constant 0 : i32
    return %arg0, %c0_i32, %c0_i32_0 : i32, i32, i32
  }
  func.func @transform_1(%arg0: i32) -> (i32, i32) {
    %c0_i32 = arith.constant 0 : i32
    %c0_i32_0 = arith.constant 0 : i32
    %c0_i32_1 = arith.constant 0 : i32
    return %c0_i32, %c0_i32_0 : i32, i32
  }
  func.func @transform_2(%arg0: i32) -> (i32, i32) {
    %c0_i32 = arith.constant 0 : i32
    %c0_i32_0 = arith.constant 0 : i32
    %c0_i32_1 = arith.constant 0 : i32
    return %c0_i32, %c0_i32_0 : i32, i32
  }
  func.func @transform_3(%arg0: i32) -> (i32, i32, i32) {
    %c0_i32 = arith.constant 0 : i32
    %c0_i32_0 = arith.constant 0 : i32
    %c0_i32_1 = arith.constant 0 : i32
    return %arg0, %c0_i32, %c0_i32_0 : i32, i32, i32
  }
}

</mosaic_0001>

<bundles_post_ra>
// kernel: tpu_custom_call.1
= control target key start
LH: loop header
LB: loop body
LE: loop exit
PB: predicated region body
PF: predicated region fallthrough
CT: control target
= control target key end

     0   :  { %8 = vsyncpa [#allocation3], 0  ;;  %s605_s0 = inlined_call_operand.hbm [shape: f32[8,16,16], index: 0, kind: input, shape index: {}]   ;;  %s606_s1 = inlined_call_operand.vmem [shape: f32[5,14], index: 1, kind: input, shape index: {}]   ;;  %s607_s2 = inlined_call_operand.vmem [shape: f32[14,5], index: 2, kind: input, shape index: {}]   ;;  %s608_s3 = inlined_call_operand.vmem [shape: f32[8,5,5], index: 3, kind: output, shape index: {}]  }
   0x1   :  { %10 = vsyncpa [#allocation3 + $0x1], 0  ;;  %s501_s12 = smov 0   ;;  %s503_s13 = smov 0  }
   0x2   :  { %s505_s14 = smov 0   ;;  %s507_s15 = smov 0  }
   0x3 LB: > { %s520_s16 = sadd.s32 4294967295, %s475_s15   ;;  %s523_s17 = sadd.s32 1, %s475_s15   ;;  %s475_s15 = sphi %s507_s15, %s615_s15   ;;  %s471_s14 = sphi %s505_s14, %s614_s14   ;;  %s467_s13 = sphi %s503_s13, %s613_s13   ;;  %s463_s12 = sphi %s501_s12, %s612_s12  }
   0x4   : > { %s20_s18 = ssub.s32 %s475_s15, %s523_s17  ;;  %s23_s19 = sadd.s32 1, %s471_s14 }
   0x5   : > { %p21_p0 = scmp.eq.s32.totalorder %s20_s18, 0  ;;  %p30_p1 = scmp.ne.s32.totalorder %s471_s14, %s467_s13 }
   0x6   : > { %p31_p2 = scmp.eq.s32.totalorder %s475_s15, 0  ;;  %p36_p3 = scmp.ne.s32.totalorder %s467_s13, %s463_s12 }
   0x7   : > { %s533_s20 = scalar_select %p21_p0, %s471_s14, %s23_s19  }
   0x8   : > { %p535_p4 = por %p31_p2, %p30_p1  ;;  %p37_p5 = scmp.eq.s32.totalorder %s520_s16, 0 }
   0x9   : > { %p374_p6 = scmp.lt.s32.totalorder %s475_s15, 8  ;;  %s134_s23 = sand.u32 1, %s471_s14  }
   0xa   : > { %p541_p7 = por %p37_p5, %p36_p3  ;;  %s355_s24 = sshll.u32 %s134_s23, 4 }
   0xb   : > { %s367_s25 = sshll.u32 %s475_s15, 4  ;;  %s138_s29 = scalar_lea.vmem [#allocation2], %s355_s24 }
   0xc   : > { %s143_s28 = scalar_lea.hbm %s605_s0, %s367_s25  ;;  %s146_s30 = sshll.u32 %s138_s29, 4  ;;  %s147_s30 = int_to_ptr.vmem [resolvable:$true] %s146_s30 }
   0xd   : > { %s144_s4 = sshll.u32 %s143_s28, 4  ;;  %p552_p8 = pnand %p374_p6, %p535_p4  ;;  %s145_s4 = int_to_ptr.hbm [resolvable:$true] %s144_s4 }
   0xe   : > { %p358_p9 = scmp.ge.s32.totalorder %s475_s15, 1  ;;  %s135_s6 = scalar_lea.sflag [#allocation3], %s134_s23 }
   0xf   : > { %s411_s7 = sshra.s32 %s145_s4, 4  ;;  %p415_p11 = pneg %p552_p8  ;;  %s412_s7 = int_to_ptr.hbm [resolvable:$true] %s411_s7 }
  0x10   : > { %s413_s8 = scalar_lea.hbm %s412_s7, 16  ;;  %s418_s11 = scalar_lea.hbm %s605_s0, 128 }
  0x11   : > { %p414_p10 = scmp.ne.s32.totalorder %s412_s7, %s413_s8  ;;  %p419_p0 = scmp.lt.s32.totalorder %s412_s7, %s605_s0 }
  0x12   : > { %p420_p1 = scmp.lt.s32.totalorder %s418_s11, %s413_s8 }
  0x13   : > { %p416_p12 = pnand %p415_p11, %p414_p10 }
  0x14   : > { %p421_p2 = por %p420_p1, %p419_p0 }
  0x15   : > { %p417_p13 = pneg %p416_p12 }
  0x17   : > { %p422_p3 = pnand %p421_p2, %p417_p13 }
  0x19   : > { %425 = shalt.err (!%p422_p3)
}
  0x1a   : > { %s477_s19 = smov 128   ;;  %s478_s21 = smov 8  }
  0x1b   : > { %373 = dma.hbm_to_vmem [thread:$0]  (!%p552_p8), %s145_s4, 256, %s147_s30, %s135_s6, %s477_s19, %s477_s19, %s478_s21  }
  0x1c   : > { %p154_p4 = scmp.lt.s32.totalorder %s475_s15, 9 }
  0x1e   : > { %p155_p5 = pnand %p358_p9, %p154_p4 }
  0x1f   : > { %s160_s23 = sand.u32 (!%p155_p5), 1, %s467_s13  }
  0x20   : > { %158 = sbr.rel (%p155_p5) target bundleno = 426 (0x1aa), region = 32  ;;  %s359_s24 = sshll.u32 (!%p155_p5), %s160_s23, 4 }
  0x21   : > { %s161_s25 = scalar_lea.sflag (!%p155_p5), [#allocation3], %s160_s23  ;;  %s164_s26 = scalar_lea.vmem (!%p155_p5), [#allocation2], %s359_s24 }
  0x25   : > { %458 = dma.done.wait (%p541_p7), %s161_s25, 256  }
  0x26   : > { %460 = vsyncadd (%p541_p7), %s161_s25, 4294967040  ;;  %v192_v0 = vld [vmem:[%s164_s26 + $0x8] sm:$0xff]  ;;  %v191_v1 = vld [vmem:[%s164_s26] sm:$0xff]  ;;  %vm195_vm0 = vcmask 1046528   ;;  %vm203_vm1 = vcmask 1045504   ;;  %s479_s15 = smov 127  }
  0x27   : > { %v197_v2 = vrot.slane %v192_v0, 1  ;;  %v205_v3 = vrot.slane %v192_v0, 2  ;;  %v196_v4 = vrot.slane %v191_v1, 1  ;;  %v204_v7 = vrot.slane %v191_v1, 2  ;;  %s480_s27 = smov 126   ;;  %v257_v22 = vld [vmem:[%s607_s2] sm:$0xff] }
  0x28   : > { %v258_v12 = vld [vmem:[%s607_s2 + $0x8] sm:$0x3f]  ;;  %v229_v21 = vld [vmem:[%s606_s1] sm:$0x1f]  ;;  %vm230_vm2 = vcmask 113664   ;;  %p187_p6 = scmp.lt.s32.totalorder %s520_s16, 7 }
  0x29   : > { %v202_v5 = vmax.f32 %v192_v0, %v197_v2  ;;  %v198_v6 = vsel %vm195_vm0, %v196_v4, %v197_v2  ;;  %v206_v10 = vsel %vm203_vm1, %v204_v7, %v205_v3  ;;  %363 = vmatpush.msk.msra.mxu1 %vm203_vm1, %v258_v12  ;;  %vm285_vm3 = vcmask 36864  }
  0x2a   : > { %v201_v9 = vmax.f32 %v191_v1, %v198_v6  ;;  %s617_s16 = smov (!%p187_p6, %s520_s16), 7 }
  0x2b   : > { %v210_v8 = vmax.f32 %v202_v5, %v205_v3  ;;  %280 = vmatpush.msra.mxu1 %v257_v22  ;;  %s360_s6 = sshll.u32 %s617_s16, 3 }
  0x2c   : > { %v209_v11 = vmax.f32 %v201_v9, %v206_v10  ;;  %s190_s9 = scalar_lea.vmem %s608_s3, %s360_s6 }
  0x2d   : > { %215 = vrot.lane.b32.xlu0 %v210_v8, %s479_s15  ;;  %223 = vrot.lane.b32.xlu1 %v210_v8, %s480_s27 }
  0x35   : > { %213 = vrot.lane.b32.xlu0 %v209_v11, %s479_s15  ;;  %221 = vrot.lane.b32.xlu1 %v209_v11, %s480_s27 }
  0x9f   : > { %v216_v13 = vpop.permute.xlu0 %215  ;;  %v224_v14 = vpop.permute.xlu1 %223 }
  0xa0   : > { %v220_v15 = vmax.f32 %v210_v8, %v216_v13 }
  0xa2   : > { %v228_v16 = vmax.f32 %v220_v15, %v224_v14 }
  0xa4   : > { %361 = vmatpush.msk.msra.mxu0 %vm203_vm1, %v228_v16 }
  0xa7   : > { %v214_v17 = vpop.permute.xlu0 %213  ;;  %v222_v18 = vpop.permute.xlu1 %221 }
  0xa8   : > { %v219_v19 = vmax.f32 %v209_v11, %v214_v17 }
  0xaa   : > { %v227_v20 = vmax.f32 %v219_v19, %v222_v18 }
  0xac   : > { %252 = vmatpush.msra.mxu0 %v227_v20 }
  0xad   : > { %362 = vmatmul.msk.f32.vlgmr.msra.gmra.mxu0 %vm230_vm2, %v229_v21 }
 0x12a   : > { %v254_v23 = vpop.f32.mrf.mxu0 }
 0x12b   : > { %364 = vmatmul.msk.f32.vlgmr.msra.gmra.mxu1 %vm230_vm2, %v254_v23 }
 0x1a8   : > { %v282_v24 = vpop.f32.mrf.mxu1 }
 0x1a9   : > { %286 = vst.msk [vmem:[%s190_s9] sm:$0x1f] %vm285_vm3, %v282_v24 }
 0x1aa PF: > { %p13_p7 = scmp.ge.s32.totalorder %s523_s17, 10   ;;  %s612_s12 = smov %s467_s13 }
 0x1ab   : > { %s613_s13 = smov %s471_s14  ;;  %s614_s14 = smov %s533_s20 }
 0x1ac   : > { %s615_s15 = smov %s523_s17  ;;  %15 = sbr.rel (!%p13_p7) target bundleno = 3 (0x3), region = 72 }
 0x1b1   :  { %306 = vsyncpa [#allocation3], 1 }
 0x1b2   :  { %308 = vsyncpa [#allocation3 + $0x1], 1 }

</bundles_post_ra>
